<compile_context>
chip_gen: v7x
topology: tpu7x:2x2x1
jax: 0.10.0
libtpu: 0.0.40
codegen_flags: <defaults>
</compile_context>

<pallas_src>
import math

import jax
import jax.numpy as jnp
from jax.experimental import pallas as pl
from jax.experimental.pallas import tpu as pltpu

_LANE = 128
_SUBLANE = 8


def _round_up(x, m):
    return ((x + m - 1) // m) * m


def _make_kernel(has_proj, beta, compute_dtype):
    """Build the fused block kernel. `has_proj`, `beta`, `compute_dtype` are static."""
    if beta > 0:
        inv_beta = 1.0 / float(beta)

        def act(z):
            # PyTorch Softplus(beta, threshold=20): (1/beta)*log(1 + exp(beta*z)),
            # reverting to identity where beta*z > 20.  exp/log run on the EUP.
            zb = z * float(beta)
            sp = jnp.log(1.0 + jnp.exp(jnp.minimum(zb, 20.0))) * inv_beta
            return jnp.where(zb > 20.0, z, sp)
    else:

        def act(z):
            return jnp.maximum(z, 0.0)

    def kernel(*refs):
        if has_proj:
            x_ref, w0_ref, b0_ref, w1_ref, b1_ref, ws_ref, o_ref = refs
        else:
            x_ref, w0_ref, b0_ref, w1_ref, b1_ref, o_ref = refs
        # Elementwise work stays in f32; only MXU operands are cast to compute_dtype.
        x = x_ref[...].astype(jnp.float32)
        h0 = act(x).astype(compute_dtype)
        net = jnp.dot(h0, w0_ref[...], preferred_element_type=jnp.float32) + b0_ref[...]
        h1 = act(net).astype(compute_dtype)
        dx = jnp.dot(h1, w1_ref[...], preferred_element_type=jnp.float32) + b1_ref[...]
        if has_proj:
            x_s = jnp.dot(x.astype(compute_dtype), ws_ref[...],
                          preferred_element_type=jnp.float32)
        else:
            x_s = x  # identity shortcut fused as a VPU add
        o_ref[...] = (dx + x_s).astype(o_ref.dtype)

    return kernel


def prepare_params(w0_t, b0, w1_t, b1, ws_t=None, *, compute_dtype=jnp.bfloat16):
    """Pad feature dims to lane multiples and cast weights to the MXU compute dtype ONCE.

    Cache the returned dict and reuse it across calls (no per-call pad/cast copies).
    Biases stay f32 (they are added onto f32 accumulators).  `compute_dtype` is the
    explicit MXU operand dtype; bf16 (default) trades ~1e-2 relative error for
    3-6x MXU throughput; pass jnp.float32 for exact-reference numerics.
    """
    size_in, size_h = w0_t.shape
    size_out = w1_t.shape[1]
    in_p = _round_up(size_in, _LANE)
    h_p = _round_up(size_h, _LANE)
    out_p = _round_up(size_out, _LANE)
    w0p = jnp.pad(w0_t, ((0, in_p - size_in), (0, h_p - size_h))).astype(compute_dtype)
    b0p = jnp.pad(b0, (0, h_p - size_h)).reshape(1, h_p).astype(jnp.float32)
    w1p = jnp.pad(w1_t, ((0, h_p - size_h), (0, out_p - size_out))).astype(compute_dtype)
    b1p = jnp.pad(b1, (0, out_p - size_out)).reshape(1, out_p).astype(jnp.float32)
    wsp = None
    if ws_t is not None:
        wsp = jnp.pad(ws_t, ((0, in_p - size_in), (0, out_p - size_out))).astype(compute_dtype)
    return {
        "w0": w0p, "b0": b0p, "w1": w1p, "b1": b1p, "ws": wsp,
        "size_in": size_in, "size_h": size_h, "size_out": size_out,
        "compute_dtype": compute_dtype,
    }


def _vmem_budget_bytes():
    cap = 64 * 1024 * 1024  # conservative default = v7x per-TensorCore VMEM
    try:
        cap = int(pltpu.get_tpu_info().vmem_capacity_bytes)
    except Exception:
        pass
    return max(32 * 1024 * 1024, int(cap * 3 // 4))


def _choose_tm(n8, in_p, h_p, out_p, x_item, out_item, w_item, has_proj,
               block_rows, vmem_budget):
    # Weights are single-buffered (constant index_map + pl.Buffered(1)).
    weight_bytes = (in_p * h_p + h_p * out_p) * w_item + 4 * (h_p + out_p)
    if has_proj:
        weight_bytes += in_p * out_p * w_item
    # Per-row VMEM: double-buffered x/out tiles + f32 temporaries + compute-dtype casts.
    per_row = 2 * in_p * x_item + 2 * out_p * out_item + 6 * (in_p + h_p + out_p)
    avail = int(vmem_budget * 0.8) - weight_bytes
    if avail < _SUBLANE * per_row:
        # TODO(synk): add a K/N-tiled fallback (extra "arbitrary" grid axis + f32 VMEM
        # accumulator) for hidden dims whose resident weights exceed VMEM.
        raise ValueError(
            f"ResnetBlockFC weights ({weight_bytes / 2**20:.1f} MiB padded) do not fit "
            f"the VMEM budget ({vmem_budget / 2**20:.1f} MiB); a tiled variant is needed.")
    tm = min(_round_up(block_rows, _SUBLANE), n8,
             (avail // per_row) // _SUBLANE * _SUBLANE)
    tm = max(tm, _SUBLANE)
    # Give the grid >= 4 steps when possible so both v7x TensorCores get work and the
    # DMA pipeline has something to overlap.  Harmless on 1-TC chips (v5e/v6e).
    min_steps = 4
    if n8 > _SUBLANE and pl.cdiv(n8, tm) < min_steps:
        tm = max(_SUBLANE, min(tm, pl.cdiv(n8, min_steps) // _SUBLANE * _SUBLANE))
    return tm


def resnet_block_fc(x, params, *, beta=0, block_rows=1024):
    """ResnetBlockFC forward. `params` comes from prepare_params(); beta matches the module."""
    size_in, size_out = params["size_in"], params["size_out"]
    compute_dtype = params["compute_dtype"]
    w0p, b0p, w1p, b1p, wsp = (params["w0"], params["b0"], params["w1"],
                               params["b1"], params["ws"])
    has_proj = wsp is not None
    if not has_proj and size_in != size_out:
        raise ValueError("identity shortcut requires size_in == size_out")
    if x.shape[-1] != size_in:
        raise ValueError(f"expected last dim {size_in}, got {x.shape[-1]}")

    in_p, h_p = w0p.shape
    out_p = w1p.shape[1]

    lead = x.shape[:-1]
    n = math.prod(lead) if lead else 1
    n8 = _round_up(n, _SUBLANE)

    # Rows padded only to the sublane multiple; features to the lane multiple when
    # needed (zero-width pads are free) -> no O(tile)-sized HBM copy of x.
    x2 = jnp.pad(x.reshape(n, size_in), ((0, n8 - n), (0, in_p - size_in)))

    vmem_budget = _vmem_budget_bytes()
    x_item = x2.dtype.itemsize
    out_item = jnp.dtype(x.dtype).itemsize
    w_item = jnp.dtype(compute_dtype).itemsize
    tm = _choose_tm(n8, in_p, h_p, out_p, x_item, out_item, w_item, has_proj,
                    block_rows, vmem_budget)
    grid = (pl.cdiv(n8, tm),)

    kernel = _make_kernel(has_proj, float(beta), compute_dtype)
    operands = [x2, w0p, b0p, w1p, b1p] + ([wsp] if has_proj else [])

    flops = 2 * n8 * (in_p * h_p + h_p * out_p + (in_p * out_p if has_proj else 0))
    transcendentals = 2 * n8 * (in_p + h_p) if beta > 0 else 0
    bytes_accessed = (x2.size * x_item + n8 * out_p * out_item
                      + sum(int(o.size) * o.dtype.itemsize for o in operands[1:]))

    def call(single_buffer_weights):
        wkw = {"pipeline_mode": pl.Buffered(1)} if single_buffer_weights else {}
        in_specs = [
            pl.BlockSpec((tm, in_p), lambda i: (i, 0)),           # x rows: double-buffered
            pl.BlockSpec((in_p, h_p), lambda i: (0, 0), **wkw),   # weights/biases: one
            pl.BlockSpec((1, h_p), lambda i: (0, 0), **wkw),      # VMEM-resident copy
            pl.BlockSpec((h_p, out_p), lambda i: (0, 0), **wkw),
            pl.BlockSpec((1, out_p), lambda i: (0, 0), **wkw),
        ]
        if has_proj:
            in_specs.append(pl.BlockSpec((in_p, out_p), lambda i: (0, 0), **wkw))
        return pl.pallas_call(
            kernel,
            out_shape=jax.ShapeDtypeStruct((n8, out_p), x.dtype),
            grid=grid,
            in_specs=in_specs,
            out_specs=pl.BlockSpec((tm, out_p), lambda i: (i, 0)),
            compiler_params=pltpu.CompilerParams(
                dimension_semantics=("parallel",),
                vmem_limit_bytes=vmem_budget,
            ),
            cost_estimate=pl.CostEstimate(
                flops=flops, transcendentals=transcendentals,
                bytes_accessed=bytes_accessed),
        )(*operands)

    try:
        out = call(True)
    except Exception:
        # Fallback if this jax build rejects single-buffered pipeline_mode.
        out = call(False)

    # Padded rows pick up bias b0 and hold junk; this slice removes them - keep it.
    return out[:n, :size_out].reshape(*lead, size_out)


def init_params(key, size_in, size_out=None, size_h=None):
    """Deterministic init matching ResnetBlockFC.__init__ (weights pre-transposed to (in, out))."""
    if size_out is None:
        size_out = size_in
    if size_h is None:
        size_h = min(size_in, size_out)
    k0, ks = jax.random.split(key)
    # fc_0: kaiming_normal_(fan_in, a=0) -> std = sqrt(2/fan_in); bias zeros
    w0 = jax.random.normal(k0, (size_h, size_in), jnp.float32) * jnp.sqrt(2.0 / size_in)
    b0 = jnp.zeros((size_h,), jnp.float32)
    # fc_1: weight zeros, bias zeros
    w1 = jnp.zeros((size_out, size_h), jnp.float32)
    b1 = jnp.zeros((size_out,), jnp.float32)
    # shortcut: Linear(size_in, size_out, bias=False) kaiming-normal, or identity
    if size_in == size_out:
        ws_t = None
    else:
        ws = jax.random.normal(ks, (size_out, size_in), jnp.float32) * jnp.sqrt(2.0 / size_in)
        ws_t = ws.T
    return w0.T, b0, w1.T, b1, ws_t


def reference(x, w0_t, b0, w1_t, b1, ws_t=None, beta=0):
    if beta > 0:
        def act(z):
            zb = z * beta
            return jnp.where(zb > 20.0, z,
                             jnp.log(1.0 + jnp.exp(jnp.minimum(zb, 20.0))) / beta)
    else:
        def act(z):
            return jnp.maximum(z, 0.0)
    net = act(x) @ w0_t + b0
    dx = act(net) @ w1_t + b1
    x_s = x if ws_t is None else x @ ws_t
    return x_s + dx


if __name__ == "__main__":
    key = jax.random.PRNGKey(0)
    kx1, kx2, kp1, kp2, kw1 = jax.random.split(key, 5)
    batch, seq = 2, 8

    # Case 1: projection shortcut (size_in != size_out), nonzero fc_1 weights, bf16 MXU.
    size_in, size_out = 32, 64          # size_h defaults to min = 32
    x1 = jax.random.normal(kx1, (batch, seq, size_in), jnp.float32)
    w0_t, b0, w1_t, b1, ws_t = init_params(kp1, size_in, size_out)
    # The module zero-inits fc_1; use nonzero weights here so the fc_1 matmul and the
    # bf16 compute path are actually validated numerically.
    w1_nz = jax.random.normal(kw1, w1_t.shape, jnp.float32) * jnp.sqrt(2.0 / w1_t.shape[0])
    p1 = prepare_params(w0_t, b0, w1_nz, b1, ws_t, compute_dtype=jnp.bfloat16)
    out1 = jax.block_until_ready(resnet_block_fc(x1, p1))
    ref1 = reference(x1, w0_t, b0, w1_nz, b1, ws_t)
    assert out1.shape == (batch, seq, size_out), out1.shape
    # bf16 MXU operands vs f32 reference: expect ~1e-2 relative error.
    assert jnp.allclose(out1, ref1, atol=5e-2, rtol=5e-2), "mismatch (proj shortcut, bf16)"

    # Case 2: identity shortcut, module-default init, f32 compute dtype (tight tolerance).
    size_in2 = 64
    x2 = jax.random.normal(kx2, (batch, seq, size_in2), jnp.float32)
    w0_t2, b0_2, w1_t2, b1_2, ws_t2 = init_params(kp2, size_in2)
    assert ws_t2 is None
    p2 = prepare_params(w0_t2, b0_2, w1_t2, b1_2, None, compute_dtype=jnp.float32)
    out2 = jax.block_until_ready(resnet_block_fc(x2, p2))
    ref2 = reference(x2, w0_t2, b0_2, w1_t2, b1_2, None)
    assert out2.shape == (batch, seq, size_in2), out2.shape
    assert jnp.allclose(out2, ref2, atol=1e-4, rtol=1e-4), "mismatch (identity shortcut, f32)"

    # Case 3: Softplus activation (beta > 0), projection shortcut, f32 compute dtype.
    p3 = prepare_params(w0_t, b0, w1_nz, b1, ws_t, compute_dtype=jnp.float32)
    out3 = jax.block_until_ready(resnet_block_fc(x1, p3, beta=2.0))
    ref3 = reference(x1, w0_t, b0, w1_nz, b1, ws_t, beta=2.0)
    assert out3.shape == (batch, seq, size_out), out3.shape
    assert jnp.allclose(out3, ref3, atol=2e-3, rtol=2e-3), "mismatch (softplus, f32)"

    print("KERNEL_OK")
</pallas_src>

<mosaic_0001>
module attributes {stable_mosaic.version = 11 : i64} {
  func.func @kernel(%arg0: i32, %arg1: memref<8x128xf32, #tpu.memory_space<vmem>>, %arg2: memref<128x128xbf16, #tpu.memory_space<vmem>>, %arg3: memref<1x128xf32, #tpu.memory_space<vmem>>, %arg4: memref<128x128xbf16, #tpu.memory_space<vmem>>, %arg5: memref<1x128xf32, #tpu.memory_space<vmem>>, %arg6: memref<128x128xbf16, #tpu.memory_space<vmem>>, %arg7: memref<8x128xf32, #tpu.memory_space<vmem>>) attributes {dimension_semantics = [#tpu.dimension_semantics<parallel>], iteration_bounds = array<i64: 2>, scalar_prefetch = 0 : i64, scratch_operands = 0 : i64, tpu.core_type = #tpu.core_type<tc>, window_params = [{transform_indices = @transform_0, window_bounds = array<i64: 8, 128>}, {pipeline_mode = #tpu.pipeline_mode<synchronous>, transform_indices = @transform_1, window_bounds = array<i64: 128, 128>}, {pipeline_mode = #tpu.pipeline_mode<synchronous>, transform_indices = @transform_2, window_bounds = array<i64: 1, 128>}, {pipeline_mode = #tpu.pipeline_mode<synchronous>, transform_indices = @transform_3, window_bounds = array<i64: 128, 128>}, {pipeline_mode = #tpu.pipeline_mode<synchronous>, transform_indices = @transform_4, window_bounds = array<i64: 1, 128>}, {pipeline_mode = #tpu.pipeline_mode<synchronous>, transform_indices = @transform_5, window_bounds = array<i64: 128, 128>}, {transform_indices = @transform_6, window_bounds = array<i64: 8, 128>}]} {
    %c0 = arith.constant 0 : index
    %c0_0 = arith.constant 0 : index
    %0 = vector.load %arg1[%c0, %c0_0] : memref<8x128xf32, #tpu.memory_space<vmem>>, vector<8x128xf32>
    %cst = arith.constant 0.000000e+00 : f32
    %1 = vector.broadcast %cst : f32 to vector<8x128xf32>
    %2 = arith.maximumf %0, %1 : vector<8x128xf32>
    %3 = arith.truncf %2 : vector<8x128xf32> to vector<8x128xbf16>
    %c0_1 = arith.constant 0 : index
    %c0_2 = arith.constant 0 : index
    %4 = vector.load %arg2[%c0_1, %c0_2] : memref<128x128xbf16, #tpu.memory_space<vmem>>, vector<128x128xbf16>
    %cst_3 = arith.constant dense<0.000000e+00> : vector<8x128xf32>
    %5 = tpu.matmul %3, %4, %cst_3 {dimension_numbers = #tpu.dot_dimension_numbers<[1], [0], [0], [1], [0, 0, 1, 1], [], []>} : vector<8x128xbf16>, vector<128x128xbf16>, vector<8x128xf32> -> vector<8x128xf32>
    %c0_4 = arith.constant 0 : index
    %c0_5 = arith.constant 0 : index
    %6 = vector.load %arg3[%c0_4, %c0_5] : memref<1x128xf32, #tpu.memory_space<vmem>>, vector<1x128xf32>
    %7 = vector.broadcast %6 : vector<1x128xf32> to vector<8x128xf32>
    %8 = arith.addf %5, %7 : vector<8x128xf32>
    %cst_6 = arith.constant 0.000000e+00 : f32
    %9 = vector.broadcast %cst_6 : f32 to vector<8x128xf32>
    %10 = arith.maximumf %8, %9 : vector<8x128xf32>
    %11 = arith.truncf %10 : vector<8x128xf32> to vector<8x128xbf16>
    %c0_7 = arith.constant 0 : index
    %c0_8 = arith.constant 0 : index
    %12 = vector.load %arg4[%c0_7, %c0_8] : memref<128x128xbf16, #tpu.memory_space<vmem>>, vector<128x128xbf16>
    %cst_9 = arith.constant dense<0.000000e+00> : vector<8x128xf32>
    %13 = tpu.matmul %11, %12, %cst_9 {dimension_numbers = #tpu.dot_dimension_numbers<[1], [0], [0], [1], [0, 0, 1, 1], [], []>} : vector<8x128xbf16>, vector<128x128xbf16>, vector<8x128xf32> -> vector<8x128xf32>
    %c0_10 = arith.constant 0 : index
    %c0_11 = arith.constant 0 : index
    %14 = vector.load %arg5[%c0_10, %c0_11] : memref<1x128xf32, #tpu.memory_space<vmem>>, vector<1x128xf32>
    %15 = vector.broadcast %14 : vector<1x128xf32> to vector<8x128xf32>
    %16 = arith.addf %13, %15 : vector<8x128xf32>
    %17 = arith.truncf %0 : vector<8x128xf32> to vector<8x128xbf16>
    %c0_12 = arith.constant 0 : index
    %c0_13 = arith.constant 0 : index
    %18 = vector.load %arg6[%c0_12, %c0_13] : memref<128x128xbf16, #tpu.memory_space<vmem>>, vector<128x128xbf16>
    %cst_14 = arith.constant dense<0.000000e+00> : vector<8x128xf32>
    %19 = tpu.matmul %17, %18, %cst_14 {dimension_numbers = #tpu.dot_dimension_numbers<[1], [0], [0], [1], [0, 0, 1, 1], [], []>} : vector<8x128xbf16>, vector<128x128xbf16>, vector<8x128xf32> -> vector<8x128xf32>
    %20 = arith.addf %16, %19 : vector<8x128xf32>
    %c0_15 = arith.constant 0 : index
    %c0_16 = arith.constant 0 : index
    %21 = vector.load %arg7[%c0_15, %c0_16] : memref<8x128xf32, #tpu.memory_space<vmem>>, vector<8x128xf32>
    tpu.vector_store %arg7[%c0_15, %c0_16], %20 {strides = array<i32>} : memref<8x128xf32, #tpu.memory_space<vmem>>, vector<8x128xf32>,
    return
  }
  func.func @transform_0(%arg0: i32) -> (i32, i32) {
    %c0_i32 = arith.constant 0 : i32
    %c0_i32_0 = arith.constant 0 : i32
    return %arg0, %c0_i32 : i32, i32
  }
  func.func @transform_1(%arg0: i32) -> (i32, i32) {
    %c0_i32 = arith.constant 0 : i32
    %c0_i32_0 = arith.constant 0 : i32
    %c0_i32_1 = arith.constant 0 : i32
    return %c0_i32, %c0_i32_0 : i32, i32
  }
  func.func @transform_2(%arg0: i32) -> (i32, i32) {
    %c0_i32 = arith.constant 0 : i32
    %c0_i32_0 = arith.constant 0 : i32
    %c0_i32_1 = arith.constant 0 : i32
    return %c0_i32, %c0_i32_0 : i32, i32
  }
  func.func @transform_3(%arg0: i32) -> (i32, i32) {
    %c0_i32 = arith.constant 0 : i32
    %c0_i32_0 = arith.constant 0 : i32
    %c0_i32_1 = arith.constant 0 : i32
    return %c0_i32, %c0_i32_0 : i32, i32
  }
  func.func @transform_4(%arg0: i32) -> (i32, i32) {
    %c0_i32 = arith.constant 0 : i32
    %c0_i32_0 = arith.constant 0 : i32
    %c0_i32_1 = arith.constant 0 : i32
    return %c0_i32, %c0_i32_0 : i32, i32
  }
  func.func @transform_5(%arg0: i32) -> (i32, i32) {
    %c0_i32 = arith.constant 0 : i32
    %c0_i32_0 = arith.constant 0 : i32
    %c0_i32_1 = arith.constant 0 : i32
    return %c0_i32, %c0_i32_0 : i32, i32
  }
  func.func @transform_6(%arg0: i32) -> (i32, i32) {
    %c0_i32 = arith.constant 0 : i32
    %c0_i32_0 = arith.constant 0 : i32
    return %arg0, %c0_i32 : i32, i32
  }
}

module attributes {stable_mosaic.version = 11 : i64} {
  func.func @kernel(%arg0: i32, %arg1: memref<8x128xf32, #tpu.memory_space<vmem>>, %arg2: memref<128x128xbf16, #tpu.memory_space<vmem>>, %arg3: memref<1x128xf32, #tpu.memory_space<vmem>>, %arg4: memref<128x128xbf16, #tpu.memory_space<vmem>>, %arg5: memref<1x128xf32, #tpu.memory_space<vmem>>, %arg6: memref<128x128xbf16, #tpu.memory_space<vmem>>, %arg7: memref<8x128xf32, #tpu.memory_space<vmem>>) attributes {dimension_semantics = [#tpu.dimension_semantics<parallel>], iteration_bounds = array<i64: 2>, scalar_prefetch = 0 : i64, scratch_operands = 0 : i64, tpu.core_type = #tpu.core_type<tc>, window_params = [{transform_indices = @transform_0, window_bounds = array<i64: 8, 128>}, {pipeline_mode = #tpu.pipeline_mode<synchronous>, transform_indices = @transform_1, window_bounds = array<i64: 128, 128>}, {pipeline_mode = #tpu.pipeline_mode<synchronous>, transform_indices = @transform_2, window_bounds = array<i64: 1, 128>}, {pipeline_mode = #tpu.pipeline_mode<synchronous>, transform_indices = @transform_3, window_bounds = array<i64: 128, 128>}, {pipeline_mode = #tpu.pipeline_mode<synchronous>, transform_indices = @transform_4, window_bounds = array<i64: 1, 128>}, {pipeline_mode = #tpu.pipeline_mode<synchronous>, transform_indices = @transform_5, window_bounds = array<i64: 128, 128>}, {transform_indices = @transform_6, window_bounds = array<i64: 8, 128>}]} {
    %c0 = arith.constant 0 : index
    %c0_0 = arith.constant 0 : index
    %0 = vector.load %arg1[%c0, %c0_0] : memref<8x128xf32, #tpu.memory_space<vmem>>, vector<8x128xf32>
    %cst = arith.constant 0.000000e+00 : f32
    %1 = vector.broadcast %cst : f32 to vector<8x128xf32>
    %2 = arith.maximumf %0, %1 : vector<8x128xf32>
    %3 = arith.truncf %2 : vector<8x128xf32> to vector<8x128xbf16>
    %c0_1 = arith.constant 0 : index
    %c0_2 = arith.constant 0 : index
    %4 = vector.load %arg2[%c0_1, %c0_2] : memref<128x128xbf16, #tpu.memory_space<vmem>>, vector<128x128xbf16>
    %cst_3 = arith.constant dense<0.000000e+00> : vector<8x128xf32>
    %5 = tpu.matmul %3, %4, %cst_3 {dimension_numbers = #tpu.dot_dimension_numbers<[1], [0], [0], [1], [0, 0, 1, 1], [], []>} : vector<8x128xbf16>, vector<128x128xbf16>, vector<8x128xf32> -> vector<8x128xf32>
    %c0_4 = arith.constant 0 : index
    %c0_5 = arith.constant 0 : index
    %6 = vector.load %arg3[%c0_4, %c0_5] : memref<1x128xf32, #tpu.memory_space<vmem>>, vector<1x128xf32>
    %7 = vector.broadcast %6 : vector<1x128xf32> to vector<8x128xf32>
    %8 = arith.addf %5, %7 : vector<8x128xf32>
    %cst_6 = arith.constant 0.000000e+00 : f32
    %9 = vector.broadcast %cst_6 : f32 to vector<8x128xf32>
    %10 = arith.maximumf %8, %9 : vector<8x128xf32>
    %11 = arith.truncf %10 : vector<8x128xf32> to vector<8x128xbf16>
    %c0_7 = arith.constant 0 : index
    %c0_8 = arith.constant 0 : index
    %12 = vector.load %arg4[%c0_7, %c0_8] : memref<128x128xbf16, #tpu.memory_space<vmem>>, vector<128x128xbf16>
    %cst_9 = arith.constant dense<0.000000e+00> : vector<8x128xf32>
    %13 = tpu.matmul %11, %12, %cst_9 {dimension_numbers = #tpu.dot_dimension_numbers<[1], [0], [0], [1], [0, 0, 1, 1], [], []>} : vector<8x128xbf16>, vector<128x128xbf16>, vector<8x128xf32> -> vector<8x128xf32>
    %c0_10 = arith.constant 0 : index
    %c0_11 = arith.constant 0 : index
    %14 = vector.load %arg5[%c0_10, %c0_11] : memref<1x128xf32, #tpu.memory_space<vmem>>, vector<1x128xf32>
    %15 = vector.broadcast %14 : vector<1x128xf32> to vector<8x128xf32>
    %16 = arith.addf %13, %15 : vector<8x128xf32>
    %17 = arith.truncf %0 : vector<8x128xf32> to vector<8x128xbf16>
    %c0_12 = arith.constant 0 : index
    %c0_13 = arith.constant 0 : index
    %18 = vector.load %arg6[%c0_12, %c0_13] : memref<128x128xbf16, #tpu.memory_space<vmem>>, vector<128x128xbf16>
    %cst_14 = arith.constant dense<0.000000e+00> : vector<8x128xf32>
    %19 = tpu.matmul %17, %18, %cst_14 {dimension_numbers = #tpu.dot_dimension_numbers<[1], [0], [0], [1], [0, 0, 1, 1], [], []>} : vector<8x128xbf16>, vector<128x128xbf16>, vector<8x128xf32> -> vector<8x128xf32>
    %20 = arith.addf %16, %19 : vector<8x128xf32>
    %c0_15 = arith.constant 0 : index
    %c0_16 = arith.constant 0 : index
    %21 = vector.load %arg7[%c0_15, %c0_16] : memref<8x128xf32, #tpu.memory_space<vmem>>, vector<8x128xf32>
    tpu.vector_store %arg7[%c0_15, %c0_16], %20 {strides = array<i32>} : memref<8x128xf32, #tpu.memory_space<vmem>>, vector<8x128xf32>,
    return
  }
  func.func @transform_0(%arg0: i32) -> (i32, i32) {
    %c0_i32 = arith.constant 0 : i32
    %c0_i32_0 = arith.constant 0 : i32
    return %arg0, %c0_i32 : i32, i32
  }
  func.func @transform_1(%arg0: i32) -> (i32, i32) {
    %c0_i32 = arith.constant 0 : i32
    %c0_i32_0 = arith.constant 0 : i32
    %c0_i32_1 = arith.constant 0 : i32
    return %c0_i32, %c0_i32_0 : i32, i32
  }
  func.func @transform_2(%arg0: i32) -> (i32, i32) {
    %c0_i32 = arith.constant 0 : i32
    %c0_i32_0 = arith.constant 0 : i32
    %c0_i32_1 = arith.constant 0 : i32
    return %c0_i32, %c0_i32_0 : i32, i32
  }
  func.func @transform_3(%arg0: i32) -> (i32, i32) {
    %c0_i32 = arith.constant 0 : i32
    %c0_i32_0 = arith.constant 0 : i32
    %c0_i32_1 = arith.constant 0 : i32
    return %c0_i32, %c0_i32_0 : i32, i32
  }
  func.func @transform_4(%arg0: i32) -> (i32, i32) {
    %c0_i32 = arith.constant 0 : i32
    %c0_i32_0 = arith.constant 0 : i32
    %c0_i32_1 = arith.constant 0 : i32
    return %c0_i32, %c0_i32_0 : i32, i32
  }
  func.func @transform_5(%arg0: i32) -> (i32, i32) {
    %c0_i32 = arith.constant 0 : i32
    %c0_i32_0 = arith.constant 0 : i32
    %c0_i32_1 = arith.constant 0 : i32
    return %c0_i32, %c0_i32_0 : i32, i32
  }
  func.func @transform_6(%arg0: i32) -> (i32, i32) {
    %c0_i32 = arith.constant 0 : i32
    %c0_i32_0 = arith.constant 0 : i32
    return %arg0, %c0_i32 : i32, i32
  }
}

</mosaic_0001>

<bundles_post_ra>
// kernel: tpu_custom_call.1
= control target key start
LH: loop header
LB: loop body
LE: loop exit
PB: predicated region body
PF: predicated region fallthrough
CT: control target
= control target key end

     0   :  { %11 = vsyncpa [#allocation3], 0  ;;  %s1540_s0 = inlined_call_operand.hbm [shape: f32[16,128], index: 0, kind: input, shape index: {}]   ;;  %s1541_s1 = inlined_call_operand.hbm [shape: bf16[128,128], index: 1, kind: input, shape index: {}]   ;;  %s1542_s2 = inlined_call_operand.vmem [shape: f32[1,128], index: 2, kind: input, shape index: {}]   ;;  %s1543_s3 = inlined_call_operand.hbm [shape: bf16[128,128], index: 3, kind: input, shape index: {}]   ;;  %s1544_s4 = inlined_call_operand.vmem [shape: f32[1,128], index: 4, kind: input, shape index: {}]   ;;  %s1545_s5 = inlined_call_operand.hbm [shape: bf16[128,128], index: 5, kind: input, shape index: {}]   ;;  %s1546_s6 = inlined_call_operand.hbm [shape: f32[16,128], index: 6, kind: output, shape index: {}]  }
   0x1   :  { %13 = vsyncpa [#allocation3 + $0x1], 0 }
   0x2   :  { %14 = vsyncpa [#allocation6], 0 }
   0x3   :  { %15 = vsyncpa [#allocation9], 0 }
   0x4   :  { %16 = vsyncpa [#allocation4], 0 }
   0x5   :  { %18 = vsyncpa [#allocation4 + $0x1], 0  ;;  %s1234_s21 = smov 0   ;;  %s1236_s22 = smov 0  }
   0x6   :  { %s1238_s23 = smov 0   ;;  %s1240_s24 = smov 0  }
   0x7 LB: > { %s1255_s25 = sadd.s32 4294967295, %s1188_s24   ;;  %s759_s26 = sadd.s32 4294967294, %s1188_s24   ;;  %s1188_s24 = sphi %s1240_s24, %s1569_s24   ;;  %s1184_s23 = sphi %s1238_s23, %s1568_s23   ;;  %s1180_s22 = sphi %s1236_s22, %s1567_s22   ;;  %s1176_s21 = sphi %s1234_s21, %s1566_s21  }
   0x8   : > { %p44_p0 = scmp.ne.s32.totalorder %s1180_s22, %s1176_s21  ;;  %p1547_p1 = scmp.eq.s32.totalorder %s1255_s25, 0 }
   0x9   : > { %p179_p3 = scmp.eq.s32.totalorder %s759_s26, 1  ;;  %p760_p5 = scmp.ge.s32.totalorder %s1188_s24, 1 }
   0xa   : > { %p1264_p4 = por %p1547_p1, %p44_p0  ;;  %p186_p7 = scmp.lt.s32.totalorder %s1188_s24, 3 }
   0xb   : > { %p1269_p6 = por %p179_p3, %p44_p0  ;;  %s1190_s30 = smov [#allocation5]  }
   0xc   : > { %s1550_s27 = scalar_select %p1264_p4, 1, 0 }
   0xd   : > { %s1551_s28 = scalar_select %p1269_p6, 1, 0 }
   0xe   : > { %p1274_p8 = pnand %p760_p5, %p186_p7  ;;  %s198_s7 = sshll.u32 %s1190_s30, 4  ;;  %s1278_s7 = int_to_ptr.vmem [resolvable:$true] %s198_s7 }
   0xf   : > { %s1191_s9 = smov [#allocation7]   ;;  %s1192_s11 = smov [#allocation8]  }
  0x10   : > { %s1552_s29 = scalar_select %p1274_p8, 1, 0 }
  0x11   : > { %p911_p9 = pneg %p1274_p8  ;;  %s214_s10 = sshll.u32 %s1191_s9, 4  ;;  %s1289_s10 = int_to_ptr.vmem [resolvable:$true] %s214_s10 }
  0x12   : > { %s1291_s12 = sshll.u32 %s1192_s11, 4  ;;  %s1000_s15 = scalar_lea.hbm %s1541_s1, 1024  ;;  %s231_s12 = int_to_ptr.vmem [resolvable:$true] %s1291_s12 }
  0x13   : > { %p1285_p11 = pnand %p911_p9, %p1547_p1  ;;  %p1001_p12 = scmp.ne.s32.totalorder %s1541_s1, %s1000_s15 }
  0x14   : > { %p1007_p5 = scmp.lt.u32.totalorder %s1000_s15, %s1541_s1 }
  0x15   : > { %p1301_p13 = pneg %p1285_p11 }
  0x17   : > { %p1003_p0 = pnand %p1301_p13, %p1001_p12 }
  0x19   : > { %p1004_p3 = pneg %p1003_p0 }
  0x1b   : > { %p1009_p7 = pnand %p1007_p5, %p1004_p3 }
  0x1d   : > { %1012 = shalt.err (!%p1009_p7)
}
  0x1e   : > { %s1013_s26 = scalar_lea.vmem %s1278_s7, 1024  ;;  %p1021_p2 = scmp.lt.s32.totalorder %s1278_s7, %s1278_s7 }
  0x1f   : > { %p1014_p9 = scmp.ne.s32.totalorder %s1278_s7, %s1013_s26  ;;  %p1022_p6 = scmp.lt.s32.totalorder %s1013_s26, %s1013_s26 }
  0x21   : > { %p1016_p10 = pnand %p1014_p9, %p1301_p13  ;;  %p1023_p12 = por %p1022_p6, %p1021_p2 }
  0x23   : > { %p1017_p1 = pneg %p1016_p10 }
  0x25   : > { %p1024_p0 = pnand %p1023_p12, %p1017_p1 }
  0x27   : > { %1027 = shalt.err (!%p1024_p0)
}
  0x28   : > { %s1193_s30 = smov 64   ;;  %s1194_s9 = smov 4  }
  0x29   : > { %914 = dma.hbm_to_vmem [thread:$0]  (!%p1285_p11), %s1541_s1, 1024, %s1278_s7, [#allocation6], %s1193_s30, %s1193_s30, %s1194_s9  }
  0x2a   : > { %s1028_s16 = scalar_lea.hbm %s1543_s3, 1024 }
  0x2b   : > { %p1029_p1 = scmp.ne.s32.totalorder %s1543_s3, %s1028_s16  ;;  %p1035_p10 = scmp.lt.u32.totalorder %s1028_s16, %s1543_s3 }
  0x2d   : > { %p1031_p2 = pnand %p1029_p1, %p1301_p13 }
  0x2f   : > { %p1032_p6 = pneg %p1031_p2 }
  0x31   : > { %p1037_p3 = pnand %p1035_p10, %p1032_p6 }
  0x33   : > { %1040 = shalt.err (!%p1037_p3)
}
  0x34   : > { %s1041_s7 = scalar_lea.vmem %s1289_s10, 1024  ;;  %p1049_p12 = scmp.lt.s32.totalorder %s1289_s10, %s1289_s10 }
  0x35   : > { %p1042_p5 = scmp.ne.s32.totalorder %s1289_s10, %s1041_s7  ;;  %p1050_p0 = scmp.lt.s32.totalorder %s1041_s7, %s1041_s7 }
  0x37   : > { %p1044_p7 = pnand %p1042_p5, %p1301_p13  ;;  %p1051_p1 = por %p1050_p0, %p1049_p12 }
  0x39   : > { %p1045_p9 = pneg %p1044_p7 }
  0x3b   : > { %p1052_p2 = pnand %p1051_p1, %p1045_p9 }
  0x3d   : > { %1055 = shalt.err (!%p1052_p2)
}
  0x3e   : > { %917 = dma.hbm_to_vmem [thread:$0]  (!%p1285_p11), %s1543_s3, 1024, %s1289_s10, [#allocation6], %s1193_s30, %s1193_s30, %s1194_s9  }
  0x3f   : > { %s1056_s16 = scalar_lea.hbm %s1545_s5, 1024 }
  0x40   : > { %p1057_p6 = scmp.ne.s32.totalorder %s1545_s5, %s1056_s16  ;;  %p1063_p5 = scmp.lt.u32.totalorder %s1056_s16, %s1545_s5 }
  0x42   : > { %p1059_p10 = pnand %p1057_p6, %p1301_p13 }
  0x44   : > { %p1060_p3 = pneg %p1059_p10 }
  0x46   : > { %p1065_p7 = pnand %p1063_p5, %p1060_p3 }
  0x48   : > { %1068 = shalt.err (!%p1065_p7)
}
  0x49   : > { %s1069_s7 = scalar_lea.vmem %s231_s12, 1024  ;;  %p1077_p1 = scmp.lt.s32.totalorder %s231_s12, %s231_s12 }
  0x4a   : > { %p1070_p9 = scmp.ne.s32.totalorder %s231_s12, %s1069_s7  ;;  %p1078_p2 = scmp.lt.s32.totalorder %s1069_s7, %s1069_s7 }
  0x4c   : > { %p1072_p12 = pnand %p1070_p9, %p1301_p13  ;;  %p1079_p4 = por %p1078_p2, %p1077_p1 }
  0x4e   : > { %p1073_p0 = pneg %p1072_p12 }
  0x50   : > { %p1080_p8 = pnand %p1079_p4, %p1073_p0 }
  0x52   : > { %1083 = shalt.err (!%p1080_p8)
}
  0x53   : > { %920 = dma.hbm_to_vmem [thread:$0]  (!%p1285_p11), %s1545_s5, 1024, %s231_s12, [#allocation9], %s1193_s30, %s1193_s30, %s1194_s9  }
  0x54   : > { %s1374_s18 = sadd.s32 1, %s1188_s24   ;;  %s31_s13 = sadd.s32 1, %s1184_s23 }
  0x55   : > { %s28_s8 = ssub.s32 %s1188_s24, %s1374_s18  ;;  %p38_p8 = scmp.ne.s32.totalorder %s1184_s23, %s1180_s22 }
  0x56   : > { %p29_p4 = scmp.eq.s32.totalorder %s28_s8, 0  ;;  %p39_p13 = scmp.eq.s32.totalorder %s1188_s24, 0 }
  0x57   : > { %p932_p6 = scmp.lt.s32.totalorder %s1188_s24, 2  ;;  %p1555_p3 = scmp.eq.s32.totalorder %s1255_s25, 1 }
  0x58   : > { %s1384_s14 = scalar_select %p29_p4, %s1184_s23, %s31_s13  }
  0x59   : > { %p40_p10 = por %p39_p13, %p38_p8  ;;  %p1388_p5 = por %p1555_p3, %p38_p8 }
  0x5a   : > { %s244_s16 = sand.u32 1, %s1184_s23   ;;  %s766_s17 = sshll.u32 %s1188_s24, 7 }
  0x5b   : > { %s765_s12 = sshll.u32 %s244_s16, 3  ;;  %s1397_s19 = scalar_lea.hbm %s1540_s0, %s766_s17 }
  0x5c   : > { %s248_s20 = scalar_lea.vmem [#allocation2], %s765_s12  ;;  %p1399_p11 = pnand %p932_p6, %p40_p10 }
  0x5d   : > { %s255_s26 = sshll.u32 %s248_s20, 4  ;;  %s245_s10 = scalar_lea.sflag [#allocation3], %s244_s16  ;;  %s1403_s26 = int_to_ptr.vmem [resolvable:$true] %s255_s26 }
  0x5e   : > { %s1084_s11 = scalar_lea.hbm %s1397_s19, 128  ;;  %p1086_p9 = pneg %p1399_p11 }
  0x5f   : > { %p1085_p7 = scmp.ne.s32.totalorder %s1397_s19, %s1084_s11  ;;  %s1089_s17 = scalar_lea.hbm %s1540_s0, 256 }
  0x60   : > { %p1090_p1 = scmp.lt.u32.totalorder %s1397_s19, %s1540_s0  ;;  %p1091_p2 = scmp.lt.u32.totalorder %s1089_s17, %s1084_s11 }
  0x61   : > { %p1087_p12 = pnand %p1086_p9, %p1085_p7  ;;  %p1093_p8 = scmp.lt.u32.totalorder %s1084_s11, %s1397_s19 }
  0x62   : > { %p1092_p4 = por %p1091_p2, %p1090_p1 }
  0x63   : > { %p1088_p0 = pneg %p1087_p12 }
  0x64   : > { %p1094_p13 = por %p1093_p8, %p1092_p4 }
  0x66   : > { %p1095_p6 = pnand %p1094_p13, %p1088_p0 }
  0x68   : > { %1098 = shalt.err (!%p1095_p6)
}
  0x69   : > { %s1099_s16 = scalar_lea.vmem %s1403_s26, 128  ;;  %s1195_s9 = smov [#allocation2]  }
  0x6a   : > { %p1100_p10 = scmp.ne.s32.totalorder %s1403_s26, %s1099_s16  ;;  %s1104_s20 = sshll.u32 %s1195_s9, 4  ;;  %s1105_s20 = int_to_ptr.vmem [resolvable:$false] %s1104_s20 }
  0x6b   : > { %s1106_s8 = scalar_lea.vmem %s1105_s20, 256  ;;  %p1107_p12 = scmp.lt.s32.totalorder %s1403_s26, %s1105_s20 }
  0x6c   : > { %p1102_p3 = pnand %p1100_p10, %p1086_p9  ;;  %p1108_p1 = scmp.lt.s32.totalorder %s1106_s8, %s1099_s16 }
  0x6e   : > { %p1103_p7 = pneg %p1102_p3  ;;  %p1109_p2 = por %p1108_p1, %p1107_p12 }
  0x70   : > { %p1110_p4 = pnand %p1109_p2, %p1103_p7 }
  0x72   : > { %1113 = shalt.err (!%p1110_p4)
}
  0x73   : > { %924 = dma.hbm_to_vmem [thread:$0]  (!%p1399_p11), %s1397_s19, 128, %s1403_s26, %s245_s10  }
  0x74   : > { %p1558_p0 = scmp.ne.s32.totalorder %s1552_s29, 0 }
  0x75   : > { %s1433_s11 = sand.u32 (!%p1558_p0), 1, %s1180_s22   ;;  %p1559_p9 = scmp.ne.s32.totalorder (!%p1558_p0), %s1550_s27, 0 }
  0x76   : > { %264 = sbr.rel (%p1558_p0) target bundleno = 645 (0x285), region = 44  ;;  %s768_s13 = sshll.u32 (!%p1558_p0), %s1433_s11, 3 }
  0x77   : > { %s267_s17 = scalar_lea.sflag (!%p1558_p0), [#allocation3], %s1433_s11  ;;  %s1439_s12 = scalar_lea.vmem (!%p1558_p0), [#allocation2], %s768_s13 }
  0x7d   : > { %1159 = dma.done.wait (%p1559_p9), %s267_s17, 128  }
  0x7e   : > { %1161 = vsyncadd (%p1559_p9), %s267_s17, 4294967168  ;;  %p1560_p11 = scmp.eq.s32.totalorder %s1255_s25, 0 }
  0x80   : > { %1163 = dma.done.wait (%p1560_p11), [#allocation6], 2048   ;;  %p1561_p8 = pmov %p1560_p11 }
  0x82   : > { %1165 = vsyncadd (%p1561_p8), [#allocation6], 4294965248  ;;  %p1562_p13 = pmov %p1561_p8 }
  0x83   : > { %p1563_p6 = pmov %p1561_p8 }
  0x84   : > { %1167 = dma.done.wait (%p1562_p13), [#allocation9], 1024  }
  0x85   : > { %1169 = vsyncadd (%p1563_p6), [#allocation9], 4294966272  ;;  %v1196_v0 = vmov 0.0   ;;  %vm1197_vm0 = vmmov 0   ;;  %v976_v1 = vld [vmem:[#allocation5] sm:$0xff]   ;;  %v977_v2 = vld [vmem:[#allocation5 + $0x8] sm:$0xff]  }
  0x86   : > { %830 = vmatprep.subr.bf16.mxu0 %v1196_v0  ;;  %846 = vmatprep.mubr.msk.bf16.mxu0 %vm1197_vm0, %v1196_v0  ;;  %v978_v3 = vld [vmem:[#allocation5 + $0x10] sm:$0xff]   ;;  %v984_v4 = vld [vmem:[#allocation7] sm:$0xff]   ;;  %v979_v5 = vld [vmem:[#allocation5 + $0x18] sm:$0xff]   ;;  %s800_s7 = sshll.u32 %s1255_s25, 7  ;;  %s310_s10 = scalar_lea.vmem [#allocation10], %s768_s13 }
  0x87   : > { %850 = vmatprep.subr.bf16.mxu1 %v1196_v0  ;;  %866 = vmatprep.mubr.msk.bf16.mxu1 %vm1197_vm0, %v1196_v0  ;;  %v985_v6 = vld [vmem:[#allocation7 + $0x8] sm:$0xff]   ;;  %v980_v7 = vld [vmem:[#allocation5 + $0x20] sm:$0xff]   ;;  %v986_v8 = vld [vmem:[#allocation7 + $0x10] sm:$0xff]   ;;  %s660_s30 = sshll.u32 %s310_s10, 4  ;;  %s1496_s20 = scalar_lea.hbm %s1546_s6, %s800_s7  ;;  %s1498_s30 = int_to_ptr.vmem [resolvable:$true] %s660_s30 }
  0x88   : > { %831 = vmatpush3.bf16.msra.mxu0 %v976_v1  ;;  %851 = vmatpush3.bf16.msra.mxu1 %v984_v4  ;;  %v981_v9 = vld [vmem:[#allocation5 + $0x28] sm:$0xff]   ;;  %v987_v10 = vld [vmem:[#allocation7 + $0x18] sm:$0xff]   ;;  %v982_v11 = vld [vmem:[#allocation5 + $0x30] sm:$0xff]   ;;  %s647_s25 = scalar_lea.sflag [#allocation4], %s1433_s11  ;;  %s1114_s8 = scalar_lea.vmem %s1498_s30, 128 }
  0x89   : > { %832 = vmatprep.subr.bf16.mxu0 %v1196_v0  ;;  %852 = vmatprep.subr.bf16.mxu1 %v1196_v0  ;;  %v312_v12 = vld [vmem:[%s1439_s12] sm:$0xff]  ;;  %v988_v13 = vld [vmem:[#allocation7 + $0x20] sm:$0xff]   ;;  %v989_v16 = vld [vmem:[#allocation7 + $0x28] sm:$0xff]   ;;  %p1115_p10 = scmp.ne.s32.totalorder %s1498_s30, %s1114_s8  ;;  %s1198_s13 = smov [#allocation10]  }
  0x8a   : > { %v313_v14 = vmax.f32 %v312_v12, 0.0  ;;  %v983_v15 = vld [vmem:[#allocation5 + $0x38] sm:$0xff]   ;;  %v990_v18 = vld [vmem:[#allocation7 + $0x30] sm:$0xff]   ;;  %v992_v27 = vld [vmem:[#allocation8] sm:$0xff]   ;;  %v539_v36 = vpack.c.bf16 %v312_v12, %v312_v12  ;;  %s1118_s17 = sshll.u32 %s1198_s13, 4  ;;  %s1119_s17 = int_to_ptr.vmem [resolvable:$false] %s1118_s17 }
  0x8b   : > { %v991_v19 = vld [vmem:[#allocation7 + $0x38] sm:$0xff]   ;;  %v773_v20 = vld [vmem:[%s1542_s2] ss:$0 sm:$0xff]  ;;  %v993_v29 = vld [vmem:[#allocation8 + $0x8] sm:$0xff]   ;;  %p1116_p3 = pnand %p1115_p10, %p1388_p5  ;;  %s1120_s12 = scalar_lea.vmem %s1119_s17, 256 }
  0x8c   : > { %833 = vmatpush3.bf16.msra.mxu0 %v977_v2  ;;  %853 = vmatpush3.bf16.msra.mxu1 %v985_v6  ;;  %v314_v17 = vpack.c.bf16 %v313_v14, %v313_v14  ;;  %v994_v30 = vld [vmem:[#allocation8 + $0x10] sm:$0xff]   ;;  %v995_v31 = vld [vmem:[#allocation8 + $0x18] sm:$0xff]   ;;  %v996_v32 = vld [vmem:[#allocation8 + $0x20] sm:$0xff]   ;;  %p1121_p12 = scmp.lt.s32.totalorder %s1498_s30, %s1119_s17  ;;  %p1122_p1 = scmp.lt.s32.totalorder %s1120_s12, %s1114_s8 }
  0x8d   : > { %834 = vmatprep.subr.bf16.mxu0 %v1196_v0  ;;  %854 = vmatprep.subr.bf16.mxu1 %v1196_v0  ;;  %v997_v33 = vld [vmem:[#allocation8 + $0x28] sm:$0xff]   ;;  %v998_v34 = vld [vmem:[#allocation8 + $0x30] sm:$0xff]   ;;  %v999_v35 = vld [vmem:[#allocation8 + $0x38] sm:$0xff]   ;;  %p1117_p7 = pneg %p1116_p3 }
  0x8e   : > { %v782_v37 = vld [vmem:[%s1544_s4] ss:$0 sm:$0xff]  ;;  %p1123_p2 = por %p1122_p1, %p1121_p12 }
  0x90   : > { %835 = vmatpush3.bf16.msra.mxu0 %v978_v3  ;;  %855 = vmatpush3.bf16.msra.mxu1 %v986_v8  ;;  %p1124_p4 = pnand %p1123_p2, %p1117_p7 }
  0x91   : > { %836 = vmatprep.subr.bf16.mxu0 %v1196_v0  ;;  %856 = vmatprep.subr.bf16.mxu1 %v1196_v0 }
  0x94   : > { %837 = vmatpush3.bf16.msra.mxu0 %v979_v5  ;;  %857 = vmatpush3.bf16.msra.mxu1 %v987_v10 }
  0x95   : > { %838 = vmatprep.subr.bf16.mxu0 %v1196_v0  ;;  %858 = vmatprep.subr.bf16.mxu1 %v1196_v0 }
  0x98   : > { %839 = vmatpush3.bf16.msra.mxu0 %v980_v7  ;;  %859 = vmatpush3.bf16.msra.mxu1 %v988_v13 }
  0x99   : > { %840 = vmatprep.subr.bf16.mxu0 %v1196_v0  ;;  %860 = vmatprep.subr.bf16.mxu1 %v1196_v0 }
  0x9c   : > { %841 = vmatpush3.bf16.msra.mxu0 %v981_v9  ;;  %861 = vmatpush3.bf16.msra.mxu1 %v989_v16 }
  0x9d   : > { %842 = vmatprep.subr.bf16.mxu0 %v1196_v0  ;;  %862 = vmatprep.subr.bf16.mxu1 %v1196_v0 }
  0xa0   : > { %843 = vmatpush3.bf16.msra.mxu0 %v982_v11  ;;  %863 = vmatpush3.bf16.msra.mxu1 %v990_v18 }
  0xa1   : > { %844 = vmatprep.subr.bf16.mxu0 %v1196_v0  ;;  %864 = vmatprep.subr.bf16.mxu1 %v1196_v0 }
  0xa4   : > { %845 = vmatpush3.bf16.msra.mxu0 %v983_v15  ;;  %865 = vmatpush3.bf16.msra.mxu1 %v991_v19 }
  0xa5   : > { %870 = vmatprep.subr.bf16.mxu1 %v1196_v0 }
  0xa7   : > { %847 = vmatmul.mubr.bf16.vlgmr.msra.gmra.mrb[0].mxu0 %v314_v17 }
 0x17a   : > { %v420_v21 = vpop.f32.mrb[0].mxu0 }
 0x17b   : > { %v421_v22 = vadd.f32 %v773_v20, %v420_v21  ;;  %v848_v23 = vpop.f32.mrb[1].mxu0 }
 0x17c   : > { %v423_v24 = vpop.f32.mrb[2].mxu0 }
 0x17d   : > { %v426_v25 = vmax.f32 %v421_v22, 0.0  ;;  %v849_v26 = vpop.f32.mrb[3].mxu0 }
 0x17f   : > { %v427_v28 = vpack.c.bf16 %v426_v25, %v426_v25 }
 0x181   : > { %867 = vmatmul.mubr.bf16.vlgmr.msra.gmra.mrb[0].mxu1 %v427_v28 }
 0x182   : > { %871 = vmatpush3.bf16.msra.mxu1 %v992_v27  ;;  %886 = vmatprep.mubr.msk.bf16.mxu1 %vm1197_vm0, %v1196_v0 }
 0x183   : > { %872 = vmatprep.subr.bf16.mxu1 %v1196_v0 }
 0x186   : > { %873 = vmatpush3.bf16.msra.mxu1 %v993_v29 }
 0x187   : > { %874 = vmatprep.subr.bf16.mxu1 %v1196_v0 }
 0x18a   : > { %875 = vmatpush3.bf16.msra.mxu1 %v994_v30 }
 0x18b   : > { %876 = vmatprep.subr.bf16.mxu1 %v1196_v0 }
 0x18e   : > { %877 = vmatpush3.bf16.msra.mxu1 %v995_v31 }
 0x18f   : > { %878 = vmatprep.subr.bf16.mxu1 %v1196_v0 }
 0x192   : > { %879 = vmatpush3.bf16.msra.mxu1 %v996_v32 }
 0x193   : > { %880 = vmatprep.subr.bf16.mxu1 %v1196_v0 }
 0x196   : > { %881 = vmatpush3.bf16.msra.mxu1 %v997_v33 }
 0x197   : > { %882 = vmatprep.subr.bf16.mxu1 %v1196_v0 }
 0x19a   : > { %883 = vmatpush3.bf16.msra.mxu1 %v998_v34 }
 0x19b   : > { %884 = vmatprep.subr.bf16.mxu1 %v1196_v0 }
 0x19e   : > { %885 = vmatpush3.bf16.msra.mxu1 %v999_v35 }
 0x1a1   : > { %887 = vmatmul.mubr.bf16.vlgmr.msra.gmra.mrb[0].mxu1 %v539_v36 }
 0x274   : > { %v638_v38 = vpop.f32.mrb[0].mxu1 }
 0x275   : > { %v890_v39 = vadd.f32 %v782_v37, %v638_v38  ;;  %v888_v40 = vpop.f32.mrb[1].mxu1 }
 0x276   : > { %v641_v41 = vpop.f32.mrb[2].mxu1 }
 0x277   : > { %645 = vst [vmem:[%s310_s10] sm:$0xff] %v890_v39  ;;  %v889_v42 = vpop.f32.mrb[3].mxu1 }
 0x278   : > { %1127 = shalt.err (!%p1124_p4)
}
 0x279   : > { %s1128_s11 = scalar_lea.hbm %s1496_s20, 128  ;;  %s1132_s19 = scalar_lea.hbm %s1546_s6, 256 }
 0x27a   : > { %p1129_p0 = scmp.ne.s32.totalorder %s1496_s20, %s1128_s11  ;;  %p1133_p8 = scmp.lt.u32.totalorder %s1496_s20, %s1546_s6 }
 0x27b   : > { %p1134_p13 = scmp.lt.u32.totalorder %s1132_s19, %s1128_s11  ;;  %p1136_p10 = scmp.lt.u32.totalorder %s1128_s11, %s1496_s20 }
 0x27c   : > { %p1130_p9 = pnand %p1129_p0, %p1388_p5 }
 0x27d   : > { %p1135_p6 = por %p1134_p13, %p1133_p8 }
 0x27e   : > { %p1131_p11 = pneg %p1130_p9 }
 0x27f   : > { %p1137_p3 = por %p1136_p10, %p1135_p6 }
 0x281   : > { %p1138_p7 = pnand %p1137_p3, %p1131_p11 }
 0x283   : > { %1141 = shalt.err (!%p1138_p7)
}
 0x284   : > { %909 = dma.vmem_to_hbm [thread:$0]  (%p1388_p5), %s1498_s30, 128, %s1496_s20, %s647_s25  }
 0x285 PF: > { %s672_s10 = sand.u32 1, %s1176_s21   ;;  %p1564_p12 = scmp.ne.s32.totalorder %s1551_s28, 0 }
 0x286   : > { %p1565_p1 = scmp.ge.s32.totalorder %s1188_s24, 2  ;;  %s673_s16 = scalar_lea.sflag [#allocation4], %s672_s10 }
 0x288   : > { %p926_p2 = pnand %p1565_p1, %p1564_p12 }
 0x28a   : > { %1171 = dma.done.wait (!%p926_p2), %s673_s16, 128  }
 0x28b   : > { %1173 = vsyncadd (!%p926_p2), %s673_s16, 4294967168  ;;  %p21_p4 = scmp.ge.s32.totalorder %s1374_s18, 4   ;;  %s1566_s21 = smov %s1180_s22 }
 0x28c   : > { %s1567_s22 = smov %s1184_s23  ;;  %s1568_s23 = smov %s1384_s14 }
 0x28d   : > { %s1569_s24 = smov %s1374_s18  ;;  %23 = sbr.rel (!%p21_p4) target bundleno = 7 (0x7), region = 101 }
 0x294   :  { %678 = vsyncpa [#allocation3], 1 }
 0x295   :  { %680 = vsyncpa [#allocation3 + $0x1], 1 }
 0x296   :  { %681 = vsyncpa [#allocation6], 1 }
 0x297   :  { %682 = vsyncpa [#allocation9], 1 }
 0x298   :  { %683 = vsyncpa [#allocation4], 1 }
 0x299   :  { %685 = vsyncpa [#allocation4 + $0x1], 1 }

// kernel: tpu_custom_call.1
= control target key start
LH: loop header
LB: loop body
LE: loop exit
PB: predicated region body
PF: predicated region fallthrough
CT: control target
= control target key end

     0   :  { %11 = vsyncpa [#allocation3], 0  ;;  %s1540_s0 = inlined_call_operand.hbm [shape: f32[16,128], index: 0, kind: input, shape index: {}]   ;;  %s1541_s1 = inlined_call_operand.hbm [shape: bf16[128,128], index: 1, kind: input, shape index: {}]   ;;  %s1542_s2 = inlined_call_operand.vmem [shape: f32[1,128], index: 2, kind: input, shape index: {}]   ;;  %s1543_s3 = inlined_call_operand.hbm [shape: bf16[128,128], index: 3, kind: input, shape index: {}]   ;;  %s1544_s4 = inlined_call_operand.vmem [shape: f32[1,128], index: 4, kind: input, shape index: {}]   ;;  %s1545_s5 = inlined_call_operand.hbm [shape: bf16[128,128], index: 5, kind: input, shape index: {}]   ;;  %s1546_s6 = inlined_call_operand.hbm [shape: f32[16,128], index: 6, kind: output, shape index: {}]  }
   0x1   :  { %13 = vsyncpa [#allocation3 + $0x1], 0 }
   0x2   :  { %14 = vsyncpa [#allocation6], 0 }
   0x3   :  { %15 = vsyncpa [#allocation9], 0 }
   0x4   :  { %16 = vsyncpa [#allocation4], 0 }
   0x5   :  { %18 = vsyncpa [#allocation4 + $0x1], 0  ;;  %s1234_s21 = smov 0   ;;  %s1236_s22 = smov 0  }
   0x6   :  { %s1238_s23 = smov 0   ;;  %s1240_s24 = smov 0  }
   0x7 LB: > { %s1255_s25 = sadd.s32 4294967295, %s1188_s24   ;;  %s759_s26 = sadd.s32 4294967294, %s1188_s24   ;;  %s1188_s24 = sphi %s1240_s24, %s1569_s24   ;;  %s1184_s23 = sphi %s1238_s23, %s1568_s23   ;;  %s1180_s22 = sphi %s1236_s22, %s1567_s22   ;;  %s1176_s21 = sphi %s1234_s21, %s1566_s21  }
   0x8   : > { %p44_p0 = scmp.ne.s32.totalorder %s1180_s22, %s1176_s21  ;;  %p1547_p1 = scmp.eq.s32.totalorder %s1255_s25, 0 }
   0x9   : > { %p179_p3 = scmp.eq.s32.totalorder %s759_s26, 1  ;;  %p760_p5 = scmp.ge.s32.totalorder %s1188_s24, 1 }
   0xa   : > { %p1264_p4 = por %p1547_p1, %p44_p0  ;;  %p186_p7 = scmp.lt.s32.totalorder %s1188_s24, 3 }
   0xb   : > { %p1269_p6 = por %p179_p3, %p44_p0  ;;  %s1190_s30 = smov [#allocation5]  }
   0xc   : > { %s1550_s27 = scalar_select %p1264_p4, 1, 0 }
   0xd   : > { %s1551_s28 = scalar_select %p1269_p6, 1, 0 }
   0xe   : > { %p1274_p8 = pnand %p760_p5, %p186_p7  ;;  %s198_s7 = sshll.u32 %s1190_s30, 4  ;;  %s1278_s7 = int_to_ptr.vmem [resolvable:$true] %s198_s7 }
   0xf   : > { %s1191_s9 = smov [#allocation7]   ;;  %s1192_s11 = smov [#allocation8]  }
  0x10   : > { %s1552_s29 = scalar_select %p1274_p8, 1, 0 }
  0x11   : > { %p911_p9 = pneg %p1274_p8  ;;  %s214_s10 = sshll.u32 %s1191_s9, 4  ;;  %s1289_s10 = int_to_ptr.vmem [resolvable:$true] %s214_s10 }
  0x12   : > { %s1291_s12 = sshll.u32 %s1192_s11, 4  ;;  %s1000_s15 = scalar_lea.hbm %s1541_s1, 1024  ;;  %s231_s12 = int_to_ptr.vmem [resolvable:$true] %s1291_s12 }
  0x13   : > { %p1285_p11 = pnand %p911_p9, %p1547_p1  ;;  %p1001_p12 = scmp.ne.s32.totalorder %s1541_s1, %s1000_s15 }
  0x14   : > { %p1007_p5 = scmp.lt.u32.totalorder %s1000_s15, %s1541_s1 }
  0x15   : > { %p1301_p13 = pneg %p1285_p11 }
  0x17   : > { %p1003_p0 = pnand %p1301_p13, %p1001_p12 }
  0x19   : > { %p1004_p3 = pneg %p1003_p0 }
  0x1b   : > { %p1009_p7 = pnand %p1007_p5, %p1004_p3 }
  0x1d   : > { %1012 = shalt.err (!%p1009_p7)
}
  0x1e   : > { %s1013_s26 = scalar_lea.vmem %s1278_s7, 1024  ;;  %p1021_p2 = scmp.lt.s32.totalorder %s1278_s7, %s1278_s7 }
  0x1f   : > { %p1014_p9 = scmp.ne.s32.totalorder %s1278_s7, %s1013_s26  ;;  %p1022_p6 = scmp.lt.s32.totalorder %s1013_s26, %s1013_s26 }
  0x21   : > { %p1016_p10 = pnand %p1014_p9, %p1301_p13  ;;  %p1023_p12 = por %p1022_p6, %p1021_p2 }
  0x23   : > { %p1017_p1 = pneg %p1016_p10 }
  0x25   : > { %p1024_p0 = pnand %p1023_p12, %p1017_p1 }
  0x27   : > { %1027 = shalt.err (!%p1024_p0)
}
  0x28   : > { %s1193_s30 = smov 64   ;;  %s1194_s9 = smov 4  }
  0x29   : > { %914 = dma.hbm_to_vmem [thread:$0]  (!%p1285_p11), %s1541_s1, 1024, %s1278_s7, [#allocation6], %s1193_s30, %s1193_s30, %s1194_s9  }
  0x2a   : > { %s1028_s16 = scalar_lea.hbm %s1543_s3, 1024 }
  0x2b   : > { %p1029_p1 = scmp.ne.s32.totalorder %s1543_s3, %s1028_s16  ;;  %p1035_p10 = scmp.lt.u32.totalorder %s1028_s16, %s1543_s3 }
  0x2d   : > { %p1031_p2 = pnand %p1029_p1, %p1301_p13 }
  0x2f   : > { %p1032_p6 = pneg %p1031_p2 }
  0x31   : > { %p1037_p3 = pnand %p1035_p10, %p1032_p6 }
  0x33   : > { %1040 = shalt.err (!%p1037_p3)
}
  0x34   : > { %s1041_s7 = scalar_lea.vmem %s1289_s10, 1024  ;;  %p1049_p12 = scmp.lt.s32.totalorder %s1289_s10, %s1289_s10 }
  0x35   : > { %p1042_p5 = scmp.ne.s32.totalorder %s1289_s10, %s1041_s7  ;;  %p1050_p0 = scmp.lt.s32.totalorder %s1041_s7, %s1041_s7 }
  0x37   : > { %p1044_p7 = pnand %p1042_p5, %p1301_p13  ;;  %p1051_p1 = por %p1050_p0, %p1049_p12 }
  0x39   : > { %p1045_p9 = pneg %p1044_p7 }
  0x3b   : > { %p1052_p2 = pnand %p1051_p1, %p1045_p9 }
  0x3d   : > { %1055 = shalt.err (!%p1052_p2)
}
  0x3e   : > { %917 = dma.hbm_to_vmem [thread:$0]  (!%p1285_p11), %s1543_s3, 1024, %s1289_s10, [#allocation6], %s1193_s30, %s1193_s30, %s1194_s9  }
  0x3f   : > { %s1056_s16 = scalar_lea.hbm %s1545_s5, 1024 }
  0x40   : > { %p1057_p6 = scmp.ne.s32.totalorder %s1545_s5, %s1056_s16  ;;  %p1063_p5 = scmp.lt.u32.totalorder %s1056_s16, %s1545_s5 }
  0x42   : > { %p1059_p10 = pnand %p1057_p6, %p1301_p13 }
  0x44   : > { %p1060_p3 = pneg %p1059_p10 }
  0x46   : > { %p1065_p7 = pnand %p1063_p5, %p1060_p3 }
  0x48   : > { %1068 = shalt.err (!%p1065_p7)
}
  0x49   : > { %s1069_s7 = scalar_lea.vmem %s231_s12, 1024  ;;  %p1077_p1 = scmp.lt.s32.totalorder %s231_s12, %s231_s12 }
  0x4a   : > { %p1070_p9 = scmp.ne.s32.totalorder %s231_s12, %s1069_s7  ;;  %p1078_p2 = scmp.lt.s32.totalorder %s1069_s7, %s1069_s7 }
  0x4c   : > { %p1072_p12 = pnand %p1070_p9, %p1301_p13  ;;  %p1079_p4 = por %p1078_p2, %p1077_p1 }
  0x4e   : > { %p1073_p0 = pneg %p1072_p12 }
  0x50   : > { %p1080_p8 = pnand %p1079_p4, %p1073_p0 }
  0x52   : > { %1083 = shalt.err (!%p1080_p8)
}
  0x53   : > { %920 = dma.hbm_to_vmem [thread:$0]  (!%p1285_p11), %s1545_s5, 1024, %s231_s12, [#allocation9], %s1193_s30, %s1193_s30, %s1194_s9  }
  0x54   : > { %s1374_s18 = sadd.s32 1, %s1188_s24   ;;  %s31_s13 = sadd.s32 1, %s1184_s23 }
  0x55   : > { %s28_s8 = ssub.s32 %s1188_s24, %s1374_s18  ;;  %p38_p8 = scmp.ne.s32.totalorder %s1184_s23, %s1180_s22 }
  0x56   : > { %p29_p4 = scmp.eq.s32.totalorder %s28_s8, 0  ;;  %p39_p13 = scmp.eq.s32.totalorder %s1188_s24, 0 }
  0x57   : > { %p932_p6 = scmp.lt.s32.totalorder %s1188_s24, 2  ;;  %p1555_p3 = scmp.eq.s32.totalorder %s1255_s25, 1 }
  0x58   : > { %s1384_s14 = scalar_select %p29_p4, %s1184_s23, %s31_s13  }
  0x59   : > { %p40_p10 = por %p39_p13, %p38_p8  ;;  %p1388_p5 = por %p1555_p3, %p38_p8 }
  0x5a   : > { %s244_s16 = sand.u32 1, %s1184_s23   ;;  %s766_s17 = sshll.u32 %s1188_s24, 7 }
  0x5b   : > { %s765_s12 = sshll.u32 %s244_s16, 3  ;;  %s1397_s19 = scalar_lea.hbm %s1540_s0, %s766_s17 }
  0x5c   : > { %s248_s20 = scalar_lea.vmem [#allocation2], %s765_s12  ;;  %p1399_p11 = pnand %p932_p6, %p40_p10 }
  0x5d   : > { %s255_s26 = sshll.u32 %s248_s20, 4  ;;  %s245_s10 = scalar_lea.sflag [#allocation3], %s244_s16  ;;  %s1403_s26 = int_to_ptr.vmem [resolvable:$true] %s255_s26 }
  0x5e   : > { %s1084_s11 = scalar_lea.hbm %s1397_s19, 128  ;;  %p1086_p9 = pneg %p1399_p11 }
  0x5f   : > { %p1085_p7 = scmp.ne.s32.totalorder %s1397_s19, %s1084_s11  ;;  %s1089_s17 = scalar_lea.hbm %s1540_s0, 256 }
  0x60   : > { %p1090_p1 = scmp.lt.u32.totalorder %s1397_s19, %s1540_s0  ;;  %p1091_p2 = scmp.lt.u32.totalorder %s1089_s17, %s1084_s11 }
  0x61   : > { %p1087_p12 = pnand %p1086_p9, %p1085_p7  ;;  %p1093_p8 = scmp.lt.u32.totalorder %s1084_s11, %s1397_s19 }
  0x62   : > { %p1092_p4 = por %p1091_p2, %p1090_p1 }
  0x63   : > { %p1088_p0 = pneg %p1087_p12 }
  0x64   : > { %p1094_p13 = por %p1093_p8, %p1092_p4 }
  0x66   : > { %p1095_p6 = pnand %p1094_p13, %p1088_p0 }
  0x68   : > { %1098 = shalt.err (!%p1095_p6)
}
  0x69   : > { %s1099_s16 = scalar_lea.vmem %s1403_s26, 128  ;;  %s1195_s9 = smov [#allocation2]  }
  0x6a   : > { %p1100_p10 = scmp.ne.s32.totalorder %s1403_s26, %s1099_s16  ;;  %s1104_s20 = sshll.u32 %s1195_s9, 4  ;;  %s1105_s20 = int_to_ptr.vmem [resolvable:$false] %s1104_s20 }
  0x6b   : > { %s1106_s8 = scalar_lea.vmem %s1105_s20, 256  ;;  %p1107_p12 = scmp.lt.s32.totalorder %s1403_s26, %s1105_s20 }
  0x6c   : > { %p1102_p3 = pnand %p1100_p10, %p1086_p9  ;;  %p1108_p1 = scmp.lt.s32.totalorder %s1106_s8, %s1099_s16 }
  0x6e   : > { %p1103_p7 = pneg %p1102_p3  ;;  %p1109_p2 = por %p1108_p1, %p1107_p12 }
  0x70   : > { %p1110_p4 = pnand %p1109_p2, %p1103_p7 }
  0x72   : > { %1113 = shalt.err (!%p1110_p4)
}
  0x73   : > { %924 = dma.hbm_to_vmem [thread:$0]  (!%p1399_p11), %s1397_s19, 128, %s1403_s26, %s245_s10  }
  0x74   : > { %p1558_p0 = scmp.ne.s32.totalorder %s1552_s29, 0 }
  0x75   : > { %s1433_s11 = sand.u32 (!%p1558_p0), 1, %s1180_s22   ;;  %p1559_p9 = scmp.ne.s32.totalorder (!%p1558_p0), %s1550_s27, 0 }
  0x76   : > { %264 = sbr.rel (%p1558_p0) target bundleno = 645 (0x285), region = 44  ;;  %s768_s13 = sshll.u32 (!%p1558_p0), %s1433_s11, 3 }
  0x77   : > { %s267_s17 = scalar_lea.sflag (!%p1558_p0), [#allocation3], %s1433_s11  ;;  %s1439_s12 = scalar_lea.vmem (!%p1558_p0), [#allocation2], %s768_s13 }
  0x7d   : > { %1159 = dma.done.wait (%p1559_p9), %s267_s17, 128  }
  0x7e   : > { %1161 = vsyncadd (%p1559_p9), %s267_s17, 4294967168  ;;  %p1560_p11 = scmp.eq.s32.totalorder %s1255_s25, 0 }
  0x80   : > { %1163 = dma.done.wait (%p1560_p11), [#allocation6], 2048   ;;  %p1561_p8 = pmov %p1560_p11 }
  0x82   : > { %1165 = vsyncadd (%p1561_p8), [#allocation6], 4294965248  ;;  %p1562_p13 = pmov %p1561_p8 }
  0x83   : > { %p1563_p6 = pmov %p1561_p8 }
  0x84   : > { %1167 = dma.done.wait (%p1562_p13), [#allocation9], 1024  }
  0x85   : > { %1169 = vsyncadd (%p1563_p6), [#allocation9], 4294966272  ;;  %v1196_v0 = vmov 0.0   ;;  %vm1197_vm0 = vmmov 0   ;;  %v976_v1 = vld [vmem:[#allocation5] sm:$0xff]   ;;  %v977_v2 = vld [vmem:[#allocation5 + $0x8] sm:$0xff]  }
  0x86   : > { %830 = vmatprep.subr.bf16.mxu0 %v1196_v0  ;;  %846 = vmatprep.mubr.msk.bf16.mxu0 %vm1197_vm0, %v1196_v0  ;;  %v978_v3 = vld [vmem:[#allocation5 + $0x10] sm:$0xff]   ;;  %v984_v4 = vld [vmem:[#allocation7] sm:$0xff]   ;;  %v979_v5 = vld [vmem:[#allocation5 + $0x18] sm:$0xff]   ;;  %s800_s7 = sshll.u32 %s1255_s25, 7  ;;  %s310_s10 = scalar_lea.vmem [#allocation10], %s768_s13 }
  0x87   : > { %850 = vmatprep.subr.bf16.mxu1 %v1196_v0  ;;  %866 = vmatprep.mubr.msk.bf16.mxu1 %vm1197_vm0, %v1196_v0  ;;  %v985_v6 = vld [vmem:[#allocation7 + $0x8] sm:$0xff]   ;;  %v980_v7 = vld [vmem:[#allocation5 + $0x20] sm:$0xff]   ;;  %v986_v8 = vld [vmem:[#allocation7 + $0x10] sm:$0xff]   ;;  %s660_s30 = sshll.u32 %s310_s10, 4  ;;  %s1496_s20 = scalar_lea.hbm %s1546_s6, %s800_s7  ;;  %s1498_s30 = int_to_ptr.vmem [resolvable:$true] %s660_s30 }
  0x88   : > { %831 = vmatpush3.bf16.msra.mxu0 %v976_v1  ;;  %851 = vmatpush3.bf16.msra.mxu1 %v984_v4  ;;  %v981_v9 = vld [vmem:[#allocation5 + $0x28] sm:$0xff]   ;;  %v987_v10 = vld [vmem:[#allocation7 + $0x18] sm:$0xff]   ;;  %v982_v11 = vld [vmem:[#allocation5 + $0x30] sm:$0xff]   ;;  %s647_s25 = scalar_lea.sflag [#allocation4], %s1433_s11  ;;  %s1114_s8 = scalar_lea.vmem %s1498_s30, 128 }
  0x89   : > { %832 = vmatprep.subr.bf16.mxu0 %v1196_v0  ;;  %852 = vmatprep.subr.bf16.mxu1 %v1196_v0  ;;  %v312_v12 = vld [vmem:[%s1439_s12] sm:$0xff]  ;;  %v988_v13 = vld [vmem:[#allocation7 + $0x20] sm:$0xff]   ;;  %v989_v16 = vld [vmem:[#allocation7 + $0x28] sm:$0xff]   ;;  %p1115_p10 = scmp.ne.s32.totalorder %s1498_s30, %s1114_s8  ;;  %s1198_s13 = smov [#allocation10]  }
  0x8a   : > { %v313_v14 = vmax.f32 %v312_v12, 0.0  ;;  %v983_v15 = vld [vmem:[#allocation5 + $0x38] sm:$0xff]   ;;  %v990_v18 = vld [vmem:[#allocation7 + $0x30] sm:$0xff]   ;;  %v992_v27 = vld [vmem:[#allocation8] sm:$0xff]   ;;  %v539_v36 = vpack.c.bf16 %v312_v12, %v312_v12  ;;  %s1118_s17 = sshll.u32 %s1198_s13, 4  ;;  %s1119_s17 = int_to_ptr.vmem [resolvable:$false] %s1118_s17 }
  0x8b   : > { %v991_v19 = vld [vmem:[#allocation7 + $0x38] sm:$0xff]   ;;  %v773_v20 = vld [vmem:[%s1542_s2] ss:$0 sm:$0xff]  ;;  %v993_v29 = vld [vmem:[#allocation8 + $0x8] sm:$0xff]   ;;  %p1116_p3 = pnand %p1115_p10, %p1388_p5  ;;  %s1120_s12 = scalar_lea.vmem %s1119_s17, 256 }
  0x8c   : > { %833 = vmatpush3.bf16.msra.mxu0 %v977_v2  ;;  %853 = vmatpush3.bf16.msra.mxu1 %v985_v6  ;;  %v314_v17 = vpack.c.bf16 %v313_v14, %v313_v14  ;;  %v994_v30 = vld [vmem:[#allocation8 + $0x10] sm:$0xff]   ;;  %v995_v31 = vld [vmem:[#allocation8 + $0x18] sm:$0xff]   ;;  %v996_v32 = vld [vmem:[#allocation8 + $0x20] sm:$0xff]   ;;  %p1121_p12 = scmp.lt.s32.totalorder %s1498_s30, %s1119_s17  ;;  %p1122_p1 = scmp.lt.s32.totalorder %s1120_s12, %s1114_s8 }
  0x8d   : > { %834 = vmatprep.subr.bf16.mxu0 %v1196_v0  ;;  %854 = vmatprep.subr.bf16.mxu1 %v1196_v0  ;;  %v997_v33 = vld [vmem:[#allocation8 + $0x28] sm:$0xff]   ;;  %v998_v34 = vld [vmem:[#allocation8 + $0x30] sm:$0xff]   ;;  %v999_v35 = vld [vmem:[#allocation8 + $0x38] sm:$0xff]   ;;  %p1117_p7 = pneg %p1116_p3 }
  0x8e   : > { %v782_v37 = vld [vmem:[%s1544_s4] ss:$0 sm:$0xff]  ;;  %p1123_p2 = por %p1122_p1, %p1121_p12 }
  0x90   : > { %835 = vmatpush3.bf16.msra.mxu0 %v978_v3  ;;  %855 = vmatpush3.bf16.msra.mxu1 %v986_v8  ;;  %p1124_p4 = pnand %p1123_p2, %p1117_p7 }
  0x91   : > { %836 = vmatprep.subr.bf16.mxu0 %v1196_v0  ;;  %856 = vmatprep.subr.bf16.mxu1 %v1196_v0 }
  0x94   : > { %837 = vmatpush3.bf16.msra.mxu0 %v979_v5  ;;  %857 = vmatpush3.bf16.msra.mxu1 %v987_v10 }
  0x95   : > { %838 = vmatprep.subr.bf16.mxu0 %v1196_v0  ;;  %858 = vmatprep.subr.bf16.mxu1 %v1196_v0 }
  0x98   : > { %839 = vmatpush3.bf16.msra.mxu0 %v980_v7  ;;  %859 = vmatpush3.bf16.msra.mxu1 %v988_v13 }
  0x99   : > { %840 = vmatprep.subr.bf16.mxu0 %v1196_v0  ;;  %860 = vmatprep.subr.bf16.mxu1 %v1196_v0 }
  0x9c   : > { %841 = vmatpush3.bf16.msra.mxu0 %v981_v9  ;;  %861 = vmatpush3.bf16.msra.mxu1 %v989_v16 }
  0x9d   : > { %842 = vmatprep.subr.bf16.mxu0 %v1196_v0  ;;  %862 = vmatprep.subr.bf16.mxu1 %v1196_v0 }
  0xa0   : > { %843 = vmatpush3.bf16.msra.mxu0 %v982_v11  ;;  %863 = vmatpush3.bf16.msra.mxu1 %v990_v18 }
  0xa1   : > { %844 = vmatprep.subr.bf16.mxu0 %v1196_v0  ;;  %864 = vmatprep.subr.bf16.mxu1 %v1196_v0 }
  0xa4   : > { %845 = vmatpush3.bf16.msra.mxu0 %v983_v15  ;;  %865 = vmatpush3.bf16.msra.mxu1 %v991_v19 }
  0xa5   : > { %870 = vmatprep.subr.bf16.mxu1 %v1196_v0 }
  0xa7   : > { %847 = vmatmul.mubr.bf16.vlgmr.msra.gmra.mrb[0].mxu0 %v314_v17 }
 0x17a   : > { %v420_v21 = vpop.f32.mrb[0].mxu0 }
 0x17b   : > { %v421_v22 = vadd.f32 %v773_v20, %v420_v21  ;;  %v848_v23 = vpop.f32.mrb[1].mxu0 }
 0x17c   : > { %v423_v24 = vpop.f32.mrb[2].mxu0 }
 0x17d   : > { %v426_v25 = vmax.f32 %v421_v22, 0.0  ;;  %v849_v26 = vpop.f32.mrb[3].mxu0 }
 0x17f   : > { %v427_v28 = vpack.c.bf16 %v426_v25, %v426_v25 }
 0x181   : > { %867 = vmatmul.mubr.bf16.vlgmr.msra.gmra.mrb[0].mxu1 %v427_v28 }
 0x182   : > { %871 = vmatpush3.bf16.msra.mxu1 %v992_v27  ;;  %886 = vmatprep.mubr.msk.bf16.mxu1 %vm1197_vm0, %v1196_v0 }
 0x183   : > { %872 = vmatprep.subr.bf16.mxu1 %v1196_v0 }
 0x186   : > { %873 = vmatpush3.bf16.msra.mxu1 %v993_v29 }
 0x187   : > { %874 = vmatprep.subr.bf16.mxu1 %v1196_v0 }
 0x18a   : > { %875 = vmatpush3.bf16.msra.mxu1 %v994_v30 }
 0x18b   : > { %876 = vmatprep.subr.bf16.mxu1 %v1196_v0 }
 0x18e   : > { %877 = vmatpush3.bf16.msra.mxu1 %v995_v31 }
 0x18f   : > { %878 = vmatprep.subr.bf16.mxu1 %v1196_v0 }
 0x192   : > { %879 = vmatpush3.bf16.msra.mxu1 %v996_v32 }
 0x193   : > { %880 = vmatprep.subr.bf16.mxu1 %v1196_v0 }
 0x196   : > { %881 = vmatpush3.bf16.msra.mxu1 %v997_v33 }
 0x197   : > { %882 = vmatprep.subr.bf16.mxu1 %v1196_v0 }
 0x19a   : > { %883 = vmatpush3.bf16.msra.mxu1 %v998_v34 }
 0x19b   : > { %884 = vmatprep.subr.bf16.mxu1 %v1196_v0 }
 0x19e   : > { %885 = vmatpush3.bf16.msra.mxu1 %v999_v35 }
 0x1a1   : > { %887 = vmatmul.mubr.bf16.vlgmr.msra.gmra.mrb[0].mxu1 %v539_v36 }
 0x274   : > { %v638_v38 = vpop.f32.mrb[0].mxu1 }
 0x275   : > { %v890_v39 = vadd.f32 %v782_v37, %v638_v38  ;;  %v888_v40 = vpop.f32.mrb[1].mxu1 }
 0x276   : > { %v641_v41 = vpop.f32.mrb[2].mxu1 }
 0x277   : > { %645 = vst [vmem:[%s310_s10] sm:$0xff] %v890_v39  ;;  %v889_v42 = vpop.f32.mrb[3].mxu1 }
 0x278   : > { %1127 = shalt.err (!%p1124_p4)
}
 0x279   : > { %s1128_s11 = scalar_lea.hbm %s1496_s20, 128  ;;  %s1132_s19 = scalar_lea.hbm %s1546_s6, 256 }
 0x27a   : > { %p1129_p0 = scmp.ne.s32.totalorder %s1496_s20, %s1128_s11  ;;  %p1133_p8 = scmp.lt.u32.totalorder %s1496_s20, %s1546_s6 }
 0x27b   : > { %p1134_p13 = scmp.lt.u32.totalorder %s1132_s19, %s1128_s11  ;;  %p1136_p10 = scmp.lt.u32.totalorder %s1128_s11, %s1496_s20 }
 0x27c   : > { %p1130_p9 = pnand %p1129_p0, %p1388_p5 }
 0x27d   : > { %p1135_p6 = por %p1134_p13, %p1133_p8 }
 0x27e   : > { %p1131_p11 = pneg %p1130_p9 }
 0x27f   : > { %p1137_p3 = por %p1136_p10, %p1135_p6 }
 0x281   : > { %p1138_p7 = pnand %p1137_p3, %p1131_p11 }
 0x283   : > { %1141 = shalt.err (!%p1138_p7)
}
 0x284   : > { %909 = dma.vmem_to_hbm [thread:$0]  (%p1388_p5), %s1498_s30, 128, %s1496_s20, %s647_s25  }
 0x285 PF: > { %s672_s10 = sand.u32 1, %s1176_s21   ;;  %p1564_p12 = scmp.ne.s32.totalorder %s1551_s28, 0 }
 0x286   : > { %p1565_p1 = scmp.ge.s32.totalorder %s1188_s24, 2  ;;  %s673_s16 = scalar_lea.sflag [#allocation4], %s672_s10 }
 0x288   : > { %p926_p2 = pnand %p1565_p1, %p1564_p12 }
 0x28a   : > { %1171 = dma.done.wait (!%p926_p2), %s673_s16, 128  }
 0x28b   : > { %1173 = vsyncadd (!%p926_p2), %s673_s16, 4294967168  ;;  %p21_p4 = scmp.ge.s32.totalorder %s1374_s18, 4   ;;  %s1566_s21 = smov %s1180_s22 }
 0x28c   : > { %s1567_s22 = smov %s1184_s23  ;;  %s1568_s23 = smov %s1384_s14 }
 0x28d   : > { %s1569_s24 = smov %s1374_s18  ;;  %23 = sbr.rel (!%p21_p4) target bundleno = 7 (0x7), region = 101 }
 0x294   :  { %678 = vsyncpa [#allocation3], 1 }
 0x295   :  { %680 = vsyncpa [#allocation3 + $0x1], 1 }
 0x296   :  { %681 = vsyncpa [#allocation6], 1 }
 0x297   :  { %682 = vsyncpa [#allocation9], 1 }
 0x298   :  { %683 = vsyncpa [#allocation4], 1 }
 0x299   :  { %685 = vsyncpa [#allocation4 + $0x1], 1 }

</bundles_post_ra>
